<compile_context>
chip_gen: v5e
topology: v5e:2x2
jax: 0.10.0
libtpu: 0.0.40
codegen_flags: <defaults>
</compile_context>

<pallas_src>
import jax
import jax.numpy as jnp
from jax.experimental import pallas as pl
from jax.experimental.pallas import tpu as pltpu

_LANE = 128


def _init_state_kernel(state_ref, out_ref):
    # state_ref: [1, L] (resident in VMEM) -> out_ref: [TB, L]
    # Single sublane broadcast + one lane-dense store per grid step.
    out_ref[...] = jnp.broadcast_to(state_ref[...], out_ref.shape)


def _pick_block_rows(n_rows, row_bytes, itemsize, target_block_bytes):
    """Row-block size: byte-targeted, dtype-aware sublane multiple, or full extent."""
    sub = max(8, 32 // itemsize)          # 8 for f32, 16 for bf16, 32 for int8/fp8
    tb = target_block_bytes // max(row_bytes, 1)
    tb = (tb // sub) * sub
    if tb <= 0 or tb >= n_rows:
        return n_rows                     # block == full dim -> always legal
    return tb


def init_state(state_value, n_data_points, *,
               min_pallas_bytes=256 * 1024,
               target_block_bytes=8 * 1024 * 1024,
               vmem_limit_bytes=32 * 1024 * 1024):
    """Pallas equivalent of InitState.forward(n_data_points).

    state_value: [1, STATE_SIZE] learnable parameter.
    Returns [n_data_points, STATE_SIZE].
    """
    n = int(n_data_points)
    s = int(state_value.shape[-1])
    dtype = state_value.dtype
    itemsize = jnp.dtype(dtype).itemsize
    state_2d = state_value.reshape(1, s)

    # Tiny outputs: launch overhead >> write cost; let XLA fuse the broadcast.
    if n * s * itemsize < min_pallas_bytes:
        return jnp.broadcast_to(state_2d, (n, s))

    # Lane densification: present the contiguous (n, s) output as 128-wide slabs
    # when the repeated-row pattern is periodic at 128 lanes.
    if s % _LANE == 0:
        row, lane_w, out_rows, densified = state_2d, s, n, False
    elif _LANE % s == 0 and n % (_LANE // s) == 0:
        reps = _LANE // s
        row = jnp.tile(state_2d, (1, reps))          # [1, 128], built once per call
        lane_w, out_rows, densified = _LANE, (n * s) // _LANE, True
    else:
        row, lane_w, out_rows, densified = state_2d, s, n, False

    tb = _pick_block_rows(out_rows, lane_w * itemsize, itemsize, target_block_bytes)
    grid = (pl.cdiv(out_rows, tb),)

    out = pl.pallas_call(
        _init_state_kernel,
        out_shape=jax.ShapeDtypeStruct((out_rows, lane_w), dtype),
        grid=grid,
        # Whole tiny parameter resident in VMEM for the entire grid.
        in_specs=[pl.BlockSpec(memory_space=pltpu.MemorySpace.VMEM)],
        # Lane-dense output row block.
        out_specs=pl.BlockSpec((tb, lane_w), lambda i: (i, 0)),
        compiler_params=pltpu.CompilerParams(
            dimension_semantics=("parallel",),        # split row-blocks across TCs
            vmem_limit_bytes=vmem_limit_bytes),
    )(row)

    if densified:
        out = out.reshape(n, s)                       # free: same contiguous layout
    return out


if __name__ == "__main__":
    key = jax.random.PRNGKey(0)

    # --- Main small demo (matches the module defaults), forced through Pallas.
    STATE_SIZE = 32
    N_DATA_POINTS = 16
    state_value = jax.random.normal(key, (1, STATE_SIZE), dtype=jnp.float32)

    out = init_state(state_value, N_DATA_POINTS, min_pallas_bytes=0)
    jax.block_until_ready(out)
    ref = jnp.tile(state_value, (N_DATA_POINTS, 1))
    assert out.shape == (N_DATA_POINTS, STATE_SIZE)
    assert out.dtype == state_value.dtype
    assert jnp.array_equal(out, ref), "InitState tile mismatch (densified, single block)"

    # --- Ragged N with a small forced block size: exercises edge output blocks.
    N_RAGGED = 1000
    out2 = init_state(state_value, N_RAGGED, min_pallas_bytes=0,
                      target_block_bytes=4096)        # tb=8 dense rows -> ragged last block
    jax.block_until_ready(out2)
    ref2 = jnp.tile(state_value, (N_RAGGED, 1))
    assert jnp.array_equal(out2, ref2), "InitState tile mismatch (ragged grid)"

    # --- Non-densifiable STATE_SIZE (128 % 48 != 0): fallback lane width path.
    key2 = jax.random.PRNGKey(1)
    state48 = jax.random.normal(key2, (1, 48), dtype=jnp.float32)
    out3 = init_state(state48, 24, min_pallas_bytes=0)
    jax.block_until_ready(out3)
    ref3 = jnp.tile(state48, (24, 1))
    assert jnp.array_equal(out3, ref3), "InitState tile mismatch (non-dense lane width)"

    print("KERNEL_OK")
</pallas_src>

<mosaic_0001>
module attributes {stable_mosaic.version = 11 : i64} {
  func.func @_init_state_kernel(%arg0: i32, %arg1: memref<1x128xf32, #tpu.memory_space<vmem>>, %arg2: memref<4x128xf32, #tpu.memory_space<vmem>>) attributes {dimension_semantics = [#tpu.dimension_semantics<parallel>], iteration_bounds = array<i64: 1>, scalar_prefetch = 0 : i64, scratch_operands = 0 : i64, tpu.core_type = #tpu.core_type<tc>, window_params = [{pipeline_mode = #tpu.pipeline_mode<synchronous>, transform_indices = @transform_0, window_bounds = array<i64: 1, 128>}, {transform_indices = @transform_1, window_bounds = array<i64: 4, 128>}]} {
    %c0 = arith.constant 0 : index
    %c0_0 = arith.constant 0 : index
    %0 = vector.load %arg1[%c0, %c0_0] : memref<1x128xf32, #tpu.memory_space<vmem>>, vector<1x128xf32>
    %1 = vector.shape_cast %0 : vector<1x128xf32> to vector<1x128xf32>
    %2 = vector.broadcast %1 : vector<1x128xf32> to vector<4x128xf32>
    %c0_1 = arith.constant 0 : index
    %c0_2 = arith.constant 0 : index
    %3 = vector.load %arg2[%c0_1, %c0_2] : memref<4x128xf32, #tpu.memory_space<vmem>>, vector<4x128xf32>
    tpu.vector_store %arg2[%c0_1, %c0_2], %2 {strides = array<i32>} : memref<4x128xf32, #tpu.memory_space<vmem>>, vector<4x128xf32>,
    return
  }
  func.func @transform_0(%arg0: i32) -> (i32, i32) {
    %c0_i32 = arith.constant 0 : i32
    %c0_i32_0 = arith.constant 0 : i32
    %c0_i32_1 = arith.constant 0 : i32
    return %c0_i32, %c0_i32_0 : i32, i32
  }
  func.func @transform_1(%arg0: i32) -> (i32, i32) {
    %c0_i32 = arith.constant 0 : i32
    %c0_i32_0 = arith.constant 0 : i32
    return %arg0, %c0_i32 : i32, i32
  }
}

</mosaic_0001>

<bundles_post_ra>
// kernel: tpu_custom_call.1
= control target key start
LH: loop header
LB: loop body
LE: loop exit
PB: predicated region body
PF: predicated region fallthrough
CT: control target
= control target key end

     0   :  { %6 = vsyncpa [#allocation3], 0  ;;  %s118_s0 = inlined_call_operand.hbm [shape: f32[1,128], index: 0, kind: input, shape index: {}]   ;;  %s119_s1 = inlined_call_operand.hbm [shape: f32[4,128], index: 1, kind: output, shape index: {}]  }
   0x1   :  { %7 = vsyncpa [#allocation4], 0  ;;  %s13_s8 = sshll.u32 %s118_s0, 4  ;;  %s100_s9 = smov [#allocation2]   ;;  %s14_s8 = int_to_ptr.hbm [resolvable:$true] %s13_s8 }
   0x2   :  { %s15_s10 = sshll.u32 %s100_s9, 4  ;;  %s16_s10 = int_to_ptr.vmem [resolvable:$true] %s15_s10 }
   0x3   :  { %18 = dma.hbm_to_vmem [thread:$0]  %s14_s8, 16, %s16_s10, [#allocation3]  }
   0x4   :  { %96 = dma.done.wait [#allocation3], 16  }
   0x5   :  { %97 = vsyncadd [#allocation3], 4294967280  ;;  %s101_s11 = smov [#allocation5]   ;;  %s35_s15 = sshll.u32 %s119_s1, 4  ;;  %v47_v0 = vld [vmem:[#allocation2] ss:$0 sm:$0xff]  ;;  %s36_s15 = int_to_ptr.hbm [resolvable:$true] %s35_s15 }
   0x6   :  { %s33_s12 = sshll.u32 %s101_s11, 4  ;;  %27 = vst [vmem:[#allocation5] sm:$0xf] %v47_v0  ;;  %s34_s12 = int_to_ptr.vmem [resolvable:$true] %s33_s12 }
   0x7   :  { %38 = dma.vmem_to_hbm [thread:$0]  %s34_s12, 64, %s36_s15, [#allocation4]  }
   0x8   :  { %98 = dma.done.wait [#allocation4], 64  }
   0x9   :  { %99 = vsyncadd [#allocation4], 4294967232 }
   0xa   :  { %43 = vsyncpa [#allocation3], 1 }
   0xb   :  { %44 = vsyncpa [#allocation4], 1 }

</bundles_post_ra>
